<compile_context>
chip_gen: v7x
topology: tpu7x:2x2x1
jax: 0.10.0
libtpu: 0.0.40
codegen_flags: <defaults>
</compile_context>

<pallas_src>
import jax
import jax.numpy as jnp
from jax.experimental import pallas as pl
from jax.experimental.pallas import tpu as pltpu


def _seq_attention_kernel(x_ref, w1_ref, b1_ref, w2_ref, wsum_ref, wseq_ref):
    tb, s, d = x_ref.shape          # (TB, S, D) block
    a = w1_ref.shape[1]

    x3 = x_ref[...]                                    # (TB, S, D) f32
    x2 = x3.reshape(tb * s, d)                         # leading-dim merge (free when S % 8 == 0)

    # (1) Projection + tanh: one big MXU matmul over all TB*S rows of the block.
    h = jnp.tanh(
        jnp.dot(x2, w1_ref[...], preferred_element_type=jnp.float32)
        + b1_ref[...]                                  # (1, A) broadcast
    )                                                  # (TB*S, A)

    # (2) Context score: VPU multiply + lane reduction against the (1, A) context row.
    #     (Avoids an N=1 MXU matmul whose result wastes 127/128 lanes.)
    h3 = h.reshape(tb, s, a)                           # leading-dim split
    att = jnp.sum(h3 * w2_ref[...], axis=-1, keepdims=True)   # (TB, S, 1)

    # (3) Softmax over the sequence axis, independently per batch element.
    m = jnp.max(att, axis=1, keepdims=True)            # (TB, 1, 1)
    e = jnp.exp(att - m)                               # (TB, S, 1)
    denom = jnp.sum(e, axis=1, keepdims=True)          # (TB, 1, 1)
    # EUP approximate reciprocal + one Newton refinement step -> full f32 accuracy,
    # division kept off the VALU path.
    r = pl.reciprocal(denom, approx=True)
    r = r * (2.0 - denom * r)
    wgt = e * r                                        # (TB, S, 1)

    # (4) Weighted sequence and its sum over the sequence axis.
    wseq = x3 * wgt                                    # (TB, S, D), f32 math
    wseq_ref[...] = wseq.astype(wseq_ref.dtype)
    wsum_ref[...] = jnp.sum(wseq, axis=1).astype(wsum_ref.dtype)   # (TB, D)


def _pick_block_b(B, S, D, itemsize=4, streaming_budget_bytes=12 * 1024 * 1024):
    """Choose the per-step batch tile so double-buffered x + wseq blocks stay well inside
    VMEM on all generations (v7x has only 64 MiB), the grid is >= 2 (v7x megacore), and the
    wsum block rows are sublane-aligned."""
    per_elem = 2 * 2 * S * D * itemsize                # (x + wseq) * double-buffer, f32
    tb = max(1, streaming_budget_bytes // per_elem)
    tb = min(tb, B)
    if tb >= B and B >= 2:
        tb = max(1, B // 2)                            # keep grid >= 2
    if tb >= 8:
        tb = (tb // 8) * 8                             # sublane-aligned (TB, D) stores
    return max(1, tb)


def seq_attention_layer(x, w1, b1, w2, *, block_b=None, out_dtype=None,
                        vmem_limit_bytes=None):
    """x: (B, S, D); w1: (D, A); b1: (1, A) or (A,); w2: (A, 1) or (A,).
    Returns (weighted_sum (B, D), weighted_sequence (B, S, D))."""
    B, S, D = x.shape
    A = w1.shape[1]
    out_dtype = x.dtype if out_dtype is None else out_dtype   # bf16 here halves wseq writeback

    w2_row = w2.reshape(1, A)      # context vector as a row -> VPU mul + lane reduce in-kernel
    b1 = b1.reshape(1, A)

    if block_b is None:
        block_b = _pick_block_b(B, S, D)
    block_b = max(1, min(int(block_b), B))

    # Pad the batch so it divides evenly into blocks (padded rows are zeros; sliced off below).
    Bp = ((B + block_b - 1) // block_b) * block_b
    if Bp != B:
        x = jnp.pad(x, ((0, Bp - B), (0, 0), (0, 0)))

    if vmem_limit_bytes is None:
        stream = 2 * 2 * block_b * S * D * 4 + 2 * 2 * block_b * D * 4   # double-buffered blocks
        fixed = (D * A + 2 * A) * 4                                      # resident weights
        vmem_limit_bytes = int(min(max(2 * (stream + fixed), 32 * 1024 * 1024),
                                   64 * 1024 * 1024))

    # Advisory cost: the kernel is HBM-bound on reading x and writing wseq.
    cost = pl.CostEstimate(
        flops=2 * Bp * S * D * A + 2 * Bp * S * (A + D),
        transcendentals=Bp * S * (A + 1),
        bytes_accessed=4 * (2 * Bp * S * D + Bp * D + D * A + 2 * A),
    )

    grid_spec = pltpu.PrefetchScalarGridSpec(
        num_scalar_prefetch=0,
        grid=(Bp // block_b,),
        in_specs=[
            pl.BlockSpec((block_b, S, D), lambda b: (b, 0, 0)),   # x block
            pl.BlockSpec((D, A), lambda b: (0, 0)),               # w1 (resident)
            pl.BlockSpec((1, A), lambda b: (0, 0)),               # b1 (resident)
            pl.BlockSpec((1, A), lambda b: (0, 0)),               # w2 row (resident)
        ],
        out_specs=[
            pl.BlockSpec((block_b, D), lambda b: (b, 0)),          # weighted_sum
            pl.BlockSpec((block_b, S, D), lambda b: (b, 0, 0)),    # weighted_sequence
        ],
    )

    # TODO(synk): for very long sequences where a (block_b, S, D) block cannot fit VMEM,
    # switch to an S-tiled two-pass (or online-rescaled) softmax scheme instead of shrinking
    # block_b to 1.

    wsum, wseq = pl.pallas_call(
        _seq_attention_kernel,
        out_shape=(
            jax.ShapeDtypeStruct((Bp, D), out_dtype),
            jax.ShapeDtypeStruct((Bp, S, D), out_dtype),
        ),
        grid_spec=grid_spec,
        compiler_params=pltpu.CompilerParams(
            dimension_semantics=("parallel",),
            vmem_limit_bytes=vmem_limit_bytes,
        ),
        cost_estimate=cost,
    )(x, w1, b1, w2_row)

    if Bp != B:
        wsum, wseq = wsum[:B], wseq[:B]
    return wsum, wseq


def _reference(x, w1, b1, w2):
    # Pure-JAX reference mirroring the PyTorch forward exactly.
    att = jnp.tanh(jnp.einsum("bsd,da->bsa", x, w1) + b1.reshape(1, 1, -1))   # (B, S, A)
    att = jnp.einsum("bsa,ao->bso", att, w2.reshape(-1, 1))[..., 0]           # (B, S)
    w = jax.nn.softmax(att, axis=1)                                           # softmax over seq dim
    wseq = x * w[:, :, None]
    return wseq.sum(axis=1), wseq


if __name__ == "__main__":
    # Small deterministic shapes consistent with the module's forward.
    # D = 128 keeps the output stores lane-dense; B = 16 exercises the batched (TB > 1) path
    # with a grid of >= 2 steps.
    B, S, D, A = 16, 8, 128, 32

    key = jax.random.PRNGKey(0)
    kx, kw1, kb1, kw2 = jax.random.split(key, 4)

    x = jax.random.normal(kx, (B, S, D), dtype=jnp.float32)
    # Deterministic parameter init (shapes from nn.Linear(D, A) and nn.Linear(A, 1, bias=False)).
    w1 = jax.random.normal(kw1, (D, A), dtype=jnp.float32) * (1.0 / jnp.sqrt(D))
    b1 = jax.random.normal(kb1, (1, A), dtype=jnp.float32) * 0.1
    w2 = jax.random.normal(kw2, (A, 1), dtype=jnp.float32) * (1.0 / jnp.sqrt(A))

    wsum, wseq = seq_attention_layer(x, w1, b1, w2)
    jax.block_until_ready((wsum, wseq))

    ref_wsum, ref_wseq = _reference(x, w1, b1, w2)
    # Tolerance allows for MXU multi-pass f32 matmul precision differences vs the XLA einsum.
    assert jnp.allclose(wsum, ref_wsum, atol=1e-4, rtol=1e-4)
    assert jnp.allclose(wseq, ref_wseq, atol=1e-4, rtol=1e-4)

    print("KERNEL_OK")
</pallas_src>

<mosaic_0001>
module attributes {stable_mosaic.version = 11 : i64} {
  func.func @_seq_attention_kernel(%arg0: i32, %arg1: memref<8x8x128xf32, #tpu.memory_space<vmem>>, %arg2: memref<128x32xf32, #tpu.memory_space<vmem>>, %arg3: memref<1x32xf32, #tpu.memory_space<vmem>>, %arg4: memref<1x32xf32, #tpu.memory_space<vmem>>, %arg5: memref<8x128xf32, #tpu.memory_space<vmem>>, %arg6: memref<8x8x128xf32, #tpu.memory_space<vmem>>) attributes {dimension_semantics = [#tpu.dimension_semantics<parallel>], iteration_bounds = array<i64: 2>, scalar_prefetch = 0 : i64, scratch_operands = 0 : i64, tpu.core_type = #tpu.core_type<tc>, window_params = [{transform_indices = @transform_0, window_bounds = array<i64: 8, 8, 128>}, {pipeline_mode = #tpu.pipeline_mode<synchronous>, transform_indices = @transform_1, window_bounds = array<i64: 128, 32>}, {pipeline_mode = #tpu.pipeline_mode<synchronous>, transform_indices = @transform_2, window_bounds = array<i64: 1, 32>}, {pipeline_mode = #tpu.pipeline_mode<synchronous>, transform_indices = @transform_3, window_bounds = array<i64: 1, 32>}, {transform_indices = @transform_4, window_bounds = array<i64: 8, 128>}, {transform_indices = @transform_5, window_bounds = array<i64: 8, 8, 128>}]} {
    %c0 = arith.constant 0 : index
    %c0_0 = arith.constant 0 : index
    %c0_1 = arith.constant 0 : index
    %0 = vector.load %arg1[%c0, %c0_0, %c0_1] : memref<8x8x128xf32, #tpu.memory_space<vmem>>, vector<8x8x128xf32>
    %1 = vector.shape_cast %0 : vector<8x8x128xf32> to vector<64x128xf32>
    %c0_2 = arith.constant 0 : index
    %c0_3 = arith.constant 0 : index
    %2 = vector.load %arg2[%c0_2, %c0_3] : memref<128x32xf32, #tpu.memory_space<vmem>>, vector<128x32xf32>
    %cst = arith.constant dense<0.000000e+00> : vector<64x32xf32>
    %3 = tpu.matmul %1, %2, %cst {dimension_numbers = #tpu.dot_dimension_numbers<[1], [0], [0], [1], [0, 0, 1, 1], [], []>} : vector<64x128xf32>, vector<128x32xf32>, vector<64x32xf32> -> vector<64x32xf32>
    %c0_4 = arith.constant 0 : index
    %c0_5 = arith.constant 0 : index
    %4 = vector.load %arg3[%c0_4, %c0_5] : memref<1x32xf32, #tpu.memory_space<vmem>>, vector<1x32xf32>
    %5 = vector.broadcast %4 : vector<1x32xf32> to vector<64x32xf32>
    %6 = arith.addf %3, %5 : vector<64x32xf32>
    %7 = math.tanh %6 : vector<64x32xf32>
    %8 = vector.shape_cast %7 : vector<64x32xf32> to vector<8x8x32xf32>
    %c0_6 = arith.constant 0 : index
    %c0_7 = arith.constant 0 : index
    %9 = vector.load %arg4[%c0_6, %c0_7] : memref<1x32xf32, #tpu.memory_space<vmem>>, vector<1x32xf32>
    %10 = vector.shape_cast %9 : vector<1x32xf32> to vector<1x1x32xf32>
    %11 = vector.broadcast %10 : vector<1x1x32xf32> to vector<8x8x32xf32>
    %12 = arith.mulf %8, %11 : vector<8x8x32xf32>
    %cst_8 = arith.constant dense<0.000000e+00> : vector<8x8xf32>
    %13 = vector.multi_reduction <add>, %12, %cst_8 [2] : vector<8x8x32xf32> to vector<8x8xf32>
    %14 = vector.shape_cast %13 : vector<8x8xf32> to vector<8x8x1xf32>
    %cst_9 = arith.constant dense<0xFF800000> : vector<8x1xf32>
    %15 = vector.multi_reduction <maximumf>, %14, %cst_9 [1] : vector<8x8x1xf32> to vector<8x1xf32>
    %16 = vector.shape_cast %15 : vector<8x1xf32> to vector<8x1x1xf32>
    %17 = vector.broadcast %16 : vector<8x1x1xf32> to vector<8x8x1xf32>
    %18 = arith.subf %14, %17 : vector<8x8x1xf32>
    %19 = math.exp %18 : vector<8x8x1xf32>
    %cst_10 = arith.constant dense<0.000000e+00> : vector<8x1xf32>
    %20 = vector.multi_reduction <add>, %19, %cst_10 [1] : vector<8x8x1xf32> to vector<8x1xf32>
    %21 = vector.shape_cast %20 : vector<8x1xf32> to vector<8x1x1xf32>
    %22 = tpu.reciprocal %21 {approx = true} : vector<8x1x1xf32> -> vector<8x1x1xf32>
    %23 = arith.mulf %21, %22 : vector<8x1x1xf32>
    %cst_11 = arith.constant 2.000000e+00 : f32
    %24 = vector.broadcast %cst_11 : f32 to vector<8x1x1xf32>
    %25 = arith.subf %24, %23 : vector<8x1x1xf32>
    %26 = arith.mulf %22, %25 : vector<8x1x1xf32>
    %27 = vector.broadcast %26 : vector<8x1x1xf32> to vector<8x8x1xf32>
    %28 = arith.mulf %19, %27 : vector<8x8x1xf32>
    %29 = vector.broadcast %28 : vector<8x8x1xf32> to vector<8x8x128xf32>
    %30 = arith.mulf %0, %29 : vector<8x8x128xf32>
    %c0_12 = arith.constant 0 : index
    %c0_13 = arith.constant 0 : index
    %c0_14 = arith.constant 0 : index
    %31 = vector.load %arg6[%c0_12, %c0_13, %c0_14] : memref<8x8x128xf32, #tpu.memory_space<vmem>>, vector<8x8x128xf32>
    tpu.vector_store %arg6[%c0_12, %c0_13, %c0_14], %30 {strides = array<i32>} : memref<8x8x128xf32, #tpu.memory_space<vmem>>, vector<8x8x128xf32>,
    %cst_15 = arith.constant dense<0.000000e+00> : vector<8x128xf32>
    %32 = vector.multi_reduction <add>, %30, %cst_15 [1] : vector<8x8x128xf32> to vector<8x128xf32>
    %c0_16 = arith.constant 0 : index
    %c0_17 = arith.constant 0 : index
    %33 = vector.load %arg5[%c0_16, %c0_17] : memref<8x128xf32, #tpu.memory_space<vmem>>, vector<8x128xf32>
    tpu.vector_store %arg5[%c0_16, %c0_17], %32 {strides = array<i32>} : memref<8x128xf32, #tpu.memory_space<vmem>>, vector<8x128xf32>,
    return
  }
  func.func @transform_0(%arg0: i32) -> (i32, i32, i32) {
    %c0_i32 = arith.constant 0 : i32
    %c0_i32_0 = arith.constant 0 : i32
    %c0_i32_1 = arith.constant 0 : i32
    return %arg0, %c0_i32, %c0_i32_0 : i32, i32, i32
  }
  func.func @transform_1(%arg0: i32) -> (i32, i32) {
    %c0_i32 = arith.constant 0 : i32
    %c0_i32_0 = arith.constant 0 : i32
    %c0_i32_1 = arith.constant 0 : i32
    return %c0_i32, %c0_i32_0 : i32, i32
  }
  func.func @transform_2(%arg0: i32) -> (i32, i32) {
    %c0_i32 = arith.constant 0 : i32
    %c0_i32_0 = arith.constant 0 : i32
    %c0_i32_1 = arith.constant 0 : i32
    return %c0_i32, %c0_i32_0 : i32, i32
  }
  func.func @transform_3(%arg0: i32) -> (i32, i32) {
    %c0_i32 = arith.constant 0 : i32
    %c0_i32_0 = arith.constant 0 : i32
    %c0_i32_1 = arith.constant 0 : i32
    return %c0_i32, %c0_i32_0 : i32, i32
  }
  func.func @transform_4(%arg0: i32) -> (i32, i32) {
    %c0_i32 = arith.constant 0 : i32
    %c0_i32_0 = arith.constant 0 : i32
    return %arg0, %c0_i32 : i32, i32
  }
  func.func @transform_5(%arg0: i32) -> (i32, i32, i32) {
    %c0_i32 = arith.constant 0 : i32
    %c0_i32_0 = arith.constant 0 : i32
    %c0_i32_1 = arith.constant 0 : i32
    return %arg0, %c0_i32, %c0_i32_0 : i32, i32, i32
  }
}

</mosaic_0001>

<bundles_post_ra>
// kernel: tpu_custom_call.1
= control target key start
LH: loop header
LB: loop body
LE: loop exit
PB: predicated region body
PF: predicated region fallthrough
CT: control target
= control target key end

     0   :  { %11 = vsyncpa [#allocation3], 0  ;;  %s1446_s0 = inlined_call_operand.vmem [shape: f32[16,8,128], index: 0, kind: input, shape index: {}]   ;;  %s1447_s1 = inlined_call_operand.vmem [shape: f32[128,32], index: 1, kind: input, shape index: {}]   ;;  %s1448_s2 = inlined_call_operand.vmem [shape: f32[1,32], index: 2, kind: input, shape index: {}]   ;;  %s1449_s3 = inlined_call_operand.vmem [shape: f32[1,32], index: 3, kind: input, shape index: {}]   ;;  %s1450_s4 = inlined_call_operand.hbm [shape: f32[16,128], index: 4, kind: output, shape index: {0}]   ;;  %s1451_s5 = inlined_call_operand.hbm [shape: f32[16,8,128], index: 5, kind: output, shape index: {1}]  }
   0x1   :  { %13 = vsyncpa [#allocation3 + $0x1], 0 }
   0x2   :  { %14 = vsyncpa [#allocation5], 0 }
   0x3   :  { %16 = vsyncpa [#allocation5 + $0x1], 0  ;;  %s1153_s18 = smov 0   ;;  %s1155_s19 = smov 0  }
   0x4   :  { %s1157_s20 = smov 0   ;;  %s1159_s21 = smov 0  }
   0x5 LB: > { %s1174_s22 = sadd.s32 4294967295, %s1117_s21   ;;  %s795_s23 = sadd.s32 4294967294, %s1117_s21   ;;  %s1117_s21 = sphi %s1159_s21, %s1457_s21   ;;  %s1113_s20 = sphi %s1157_s20, %s1456_s20   ;;  %s1109_s19 = sphi %s1155_s19, %s1455_s19   ;;  %s1105_s18 = sphi %s1153_s18, %s1454_s18  }
   0x6   : > { %s1178_s24 = sadd.s32 1, %s1117_s21   ;;  %s118_s25 = sadd.s32 1, %s1113_s20 }
   0x7   : > { %s115_s26 = ssub.s32 %s1117_s21, %s1178_s24  ;;  %p128_p0 = scmp.ne.s32.totalorder %s1113_s20, %s1109_s19 }
   0x8   : > { %p116_p1 = scmp.eq.s32.totalorder %s115_s26, 0  ;;  %p129_p2 = scmp.eq.s32.totalorder %s1174_s22, 1 }
   0x9   : > { %p134_p3 = scmp.ne.s32.totalorder %s1109_s19, %s1105_s18  ;;  %p135_p4 = scmp.eq.s32.totalorder %s795_s23, 1 }
   0xa   : > { %s1189_s27 = scalar_select %p116_p1, %s1113_s20, %s118_s25  }
   0xb   : > { %p1191_p5 = por %p129_p2, %p128_p0  ;;  %p1195_p6 = por %p135_p4, %p134_p3 }
   0xc   : > { %p798_p7 = scmp.ge.s32.totalorder %s1117_s21, 1  ;;  %p197_p8 = scmp.lt.s32.totalorder %s1117_s21, 3 }
   0xe   : > { %p198_p9 = pnand %p798_p7, %p197_p8 }
   0xf   : > { %v245_v0 = vld [vmem:[%s1447_s1] sm:$0xff] (!%p198_p9)  ;;  %v246_v1 = vld [vmem:[%s1447_s1 + $0x8] sm:$0xff] (!%p198_p9)  ;;  %v247_v2 = vld [vmem:[%s1447_s1 + $0x10] sm:$0xff] (!%p198_p9)  ;;  %s801_s11 = sshll.u32 (!%p198_p9), %s1174_s22, 3  ;;  %vm396_vm0 = vcmask (!%p198_p9), 261120   ;;  %s1334_s14 = sand.u32 (!%p198_p9), 1, %s1109_s19  }
  0x10   : > { %201 = sbr.rel (%p198_p9) target bundleno = 539 (0x21b), region = 36  ;;  %v881_v3 = vpack.c.bf16 (!%p198_p9), %v246_v1, %v245_v0  ;;  %v248_v4 = vld [vmem:[%s1447_s1 + $0x18] sm:$0xff] (!%p198_p9)  ;;  %p231_p10 = scmp.lt.s32.totalorder (!%p198_p9), %s801_s11, 15  ;;  %v249_v6 = vld [vmem:[%s1447_s1 + $0x20] sm:$0xff] (!%p198_p9)  ;;  %v250_v7 = vld [vmem:[%s1447_s1 + $0x28] sm:$0xff] (!%p198_p9)  ;;  %vm653_vm1 = vcmask (!%p198_p9), 1041409  }
  0x11   : > { %v885_v5 = vpack.c.bf16 (!%p198_p9), %v248_v4, %v247_v2  ;;  %v889_v8 = vpack.c.bf16 (!%p198_p9), %v250_v7, %v249_v6  ;;  %v251_v9 = vld [vmem:[%s1447_s1 + $0x30] sm:$0xff] (!%p198_p9)  ;;  %v252_v10 = vld [vmem:[%s1447_s1 + $0x38] sm:$0xff] (!%p198_p9)  ;;  %v253_v14 = vld [vmem:[%s1447_s1 + $0x40] sm:$0xff] (!%p198_p9)  ;;  %s800_s15 = sshll.u32 (!%p198_p9), %s1334_s14, 6  ;;  %vm655_vm2 = vcmask (!%p198_p9), 1042434   ;;  %vm657_vm3 = vcmask (!%p198_p9), 1043459  }
  0x12   : > { %882 = vmatprep.subr.bf16.mxu0 (!%p198_p9), %v881_v3  ;;  %913 = vmatprep.subr.bf16.mxu1 (!%p198_p9), %v881_v3  ;;  %v893_v13 = vpack.c.bf16 (!%p198_p9), %v252_v10, %v251_v9  ;;  %v254_v15 = vld [vmem:[%s1447_s1 + $0x48] sm:$0xff] (!%p198_p9)  ;;  %v255_v17 = vld [vmem:[%s1447_s1 + $0x50] sm:$0xff] (!%p198_p9)  ;;  %v256_v18 = vld [vmem:[%s1447_s1 + $0x58] sm:$0xff] (!%p198_p9)  ;;  %s1340_s16 = scalar_lea.vmem (!%p198_p9), [#allocation4], %s800_s15  ;;  %s675_s6 = scalar_lea.sflag (!%p198_p9), [#allocation5], %s1334_s14 }
  0x13   : > { %884 = vmatpush3.bf16.msra.mxu0 (!%p198_p9), %v881_v3  ;;  %921 = vmatpush3.bf16.msra.mxu1 (!%p198_p9), %v881_v3  ;;  %v897_v16 = vpack.c.bf16 (!%p198_p9), %v254_v15, %v253_v14  ;;  %v901_v19 = vpack.c.bf16 (!%p198_p9), %v256_v18, %v255_v17  ;;  %v257_v20 = vld [vmem:[%s1447_s1 + $0x60] sm:$0xff] (!%p198_p9)  ;;  %v258_v21 = vld [vmem:[%s1447_s1 + $0x68] sm:$0xff] (!%p198_p9)  ;;  %v259_v23 = vld [vmem:[%s1447_s1 + $0x70] sm:$0xff] (!%p198_p9)  ;;  %s701_s17 = sshll.u32 (!%p198_p9), %s1340_s16, 4  ;;  %s1119_s8 = smov (!%p198_p9), [#allocation4]   ;;  %s1363_s17 = int_to_ptr.vmem [resolvable:$true] %s701_s17 }
  0x14   : > { %886 = vmatprep.subr.bf16.mxu0 (!%p198_p9), %v885_v5  ;;  %914 = vmatprep.subr.bf16.mxu1 (!%p198_p9), %v885_v5  ;;  %v905_v22 = vpack.c.bf16 (!%p198_p9), %v258_v21, %v257_v20  ;;  %v260_v24 = vld [vmem:[%s1447_s1 + $0x78] sm:$0xff] (!%p198_p9)  ;;  %v803_v32 = vld [vmem:[%s1448_s2] ss:$0 sm:$0xff] (!%p198_p9)  ;;  %s1023_s7 = scalar_lea.vmem (!%p198_p9), %s1363_s17, 1024  ;;  %s1027_s10 = sshll.u32 (!%p198_p9), %s1119_s8, 4  ;;  %s1028_s10 = int_to_ptr.vmem [resolvable:$false] %s1027_s10 }
  0x15   : > { %v909_v25 = vpack.c.bf16 (!%p198_p9), %v260_v24, %v259_v23  ;;  %v804_v49 = vld [vmem:[%s1449_s3] ss:$0 sm:$0xff] (!%p198_p9)  ;;  %p1024_p11 = scmp.ne.s32.totalorder (!%p198_p9), %s1363_s17, %s1023_s7  ;;  %p1030_p0 = scmp.lt.s32.totalorder (!%p198_p9), %s1363_s17, %s1028_s10 }
  0x17   : > { %s1459_s11 = smov (!%p231_p10, %s801_s11), 15  ;;  %888 = vmatpush3.bf16.msra.mxu0 %v885_v5  ;;  %922 = vmatpush3.bf16.msra.mxu1 %v885_v5  ;;  %p1025_p12 = pnand %p1024_p11, %p1191_p5 }
  0x18   : > { %s802_s23 = sshll.u32 %s1459_s11, 3  ;;  %890 = vmatprep.subr.bf16.mxu0 %v889_v8  ;;  %915 = vmatprep.subr.bf16.mxu1 %v889_v8  ;;  %s1029_s11 = scalar_lea.vmem %s1028_s10, 2048 }
  0x19   : > { %s1229_s9 = scalar_lea.vmem %s1446_s0, %s802_s23  ;;  %s812_s23 = sshll.u32 %s1174_s22, 10 }
  0x1a   : > { %v1232_v11 = vld [vmem:[%s1229_s9] sm:$0xff]  ;;  %v1264_v26 = vld [vmem:[%s1229_s9 + $0x8] sm:$0xff]  ;;  %v1270_v28 = vld [vmem:[%s1229_s9 + $0x10] sm:$0xff]  ;;  %s1368_s30 = scalar_lea.hbm %s1451_s5, %s812_s23  ;;  %p1026_p13 = pneg %p1025_p12 }
  0x1b   : > { %v1235_v12 = vld [vmem:[%s1229_s9 + $0x20] sm:$0xff]  ;;  %869 = vmatprep.mubr.f32.mxu0 %v1232_v11  ;;  %892 = vmatpush3.bf16.msra.mxu0 %v889_v8  ;;  %v1267_v27 = vld [vmem:[%s1229_s9 + $0x28] sm:$0xff]  ;;  %v1273_v29 = vld [vmem:[%s1229_s9 + $0x30] sm:$0xff]  ;;  %p1031_p1 = scmp.lt.s32.totalorder %s1029_s11, %s1023_s7 }
  0x1c   : > { %875 = vmatprep.mubr.f32.mxu1 %v1235_v12  ;;  %923 = vmatpush3.bf16.msra.mxu1 %v889_v8  ;;  %v1279_v30 = vld [vmem:[%s1229_s9 + $0x18] sm:$0xff] }
  0x1d   : > { %894 = vmatprep.subr.bf16.mxu0 %v893_v13  ;;  %916 = vmatprep.subr.bf16.mxu1 %v893_v13  ;;  %v1283_v31 = vld [vmem:[%s1229_s9 + $0x38] sm:$0xff]  ;;  %p1032_p2 = por %p1031_p1, %p1030_p0 }
  0x1f   : > { %896 = vmatpush3.bf16.msra.mxu0 %v893_v13  ;;  %p1033_p3 = pnand %p1032_p2, %p1026_p13 }
  0x20   : > { %924 = vmatpush3.bf16.msra.mxu1 %v893_v13  ;;  %898 = vmatprep.subr.bf16.mxu0 %v897_v16 }
  0x21   : > { %917 = vmatprep.subr.bf16.mxu1 %v897_v16 }
  0x23   : > { %900 = vmatpush3.bf16.msra.mxu0 %v897_v16 }
  0x24   : > { %925 = vmatpush3.bf16.msra.mxu1 %v897_v16  ;;  %902 = vmatprep.subr.bf16.mxu0 %v901_v19 }
  0x25   : > { %918 = vmatprep.subr.bf16.mxu1 %v901_v19 }
  0x27   : > { %904 = vmatpush3.bf16.msra.mxu0 %v901_v19 }
  0x28   : > { %926 = vmatpush3.bf16.msra.mxu1 %v901_v19  ;;  %906 = vmatprep.subr.bf16.mxu0 %v905_v22 }
  0x29   : > { %919 = vmatprep.subr.bf16.mxu1 %v905_v22 }
  0x2b   : > { %908 = vmatpush3.bf16.msra.mxu0 %v905_v22 }
  0x2c   : > { %927 = vmatpush3.bf16.msra.mxu1 %v905_v22  ;;  %910 = vmatprep.subr.bf16.mxu0 %v909_v25 }
  0x2d   : > { %920 = vmatprep.subr.bf16.mxu1 %v909_v25 }
  0x2f   : > { %912 = vmatpush3.bf16.msra.mxu0 %v909_v25 }
  0x30   : > { %928 = vmatpush3.bf16.msra.mxu1 %v909_v25 }
  0x32   : > { %870 = vmatmul.mubr.f32.vlgmr.msra.gmra.mrb[0].mxu0 %v1264_v26 }
  0x33   : > { %876 = vmatmul.mubr.f32.vlgmr.msra.gmra.mrb[0].mxu1 %v1267_v27  ;;  %872 = vmatprep.mubr.f32.mxu0 %v1270_v28 }
  0x34   : > { %878 = vmatprep.mubr.f32.mxu1 %v1273_v29 }
  0x36   : > { %873 = vmatmul.mubr.f32.gmra.mrb[2].mxu0 %v1279_v30 }
  0x37   : > { %879 = vmatmul.mubr.f32.gmra.mrb[2].mxu1 %v1283_v31 }
 0x105   : > { %v871_v33 = vpop.f32.mrb[0].mxu0 }
 0x106   : > { %v877_v34 = vpop.f32.mrb[0].mxu1  ;;  %v340_v35 = vadd.f32 %v871_v33, %v803_v32  ;;  %v334_v36 = vpop.f32.mrb[1].mxu0 }
 0x107   : > { %v354_v37 = vpop.f32.mrb[1].mxu1  ;;  %v335_v38 = vadd.f32 %v803_v32, %v334_v36  ;;  %v360_v47 = vadd.f32 %v877_v34, %v803_v32 }
 0x108   : > { %v355_v39 = vadd.f32 %v803_v32, %v354_v37  ;;  %975 = vtanh.f32 %v340_v35 }
 0x109   : > { %977 = vtanh.f32 %v335_v38  ;;  %v874_v40 = vpop.f32.mrb[2].mxu0 }
 0x10a   : > { %v880_v41 = vpop.f32.mrb[2].mxu1  ;;  %v350_v42 = vadd.f32 %v874_v40, %v803_v32  ;;  %v344_v43 = vpop.f32.mrb[3].mxu0  ;;  %979 = vtanh.f32 %v355_v39 }
 0x10b   : > { %v364_v44 = vpop.f32.mrb[3].mxu1  ;;  %v345_v45 = vadd.f32 %v803_v32, %v344_v43  ;;  %v370_v48 = vadd.f32 %v880_v41, %v803_v32 }
 0x10c   : > { %v365_v46 = vadd.f32 %v803_v32, %v364_v44  ;;  %981 = vtanh.f32 %v350_v42 }
 0x10d   : > { %983 = vtanh.f32 %v345_v45 }
 0x10e   : > { %985 = vtanh.f32 %v365_v46 }
 0x10f   : > { %987 = vtanh.f32 %v360_v47 }
 0x110   : > { %989 = vtanh.f32 %v370_v48 }
 0x112   : > { %v976_v50 = vpop.eup %975 }
 0x113   : > { %v978_v51 = vpop.eup %977  ;;  %v389_v52 = vmul.f32 %v976_v50, %v804_v49 }
 0x114   : > { %v980_v53 = vpop.eup %979  ;;  %v388_v55 = vmul.f32 %v978_v51, %v804_v49 }
 0x115   : > { %v400_v54 = vsel %vm396_vm0, %v389_v52, 0.0  ;;  %v392_v59 = vmul.f32 %v980_v53, %v804_v49 }
 0x116   : > { %v982_v56 = vpop.eup %981  ;;  %401 = vadd.xlane.f32.xlu0 %v400_v54  ;;  %v397_v62 = vsel %vm396_vm0, %v388_v55, 0.0 }
 0x117   : > { %v984_v57 = vpop.eup %983  ;;  %v391_v58 = vmul.f32 %v982_v56, %v804_v49  ;;  %v409_v1 = vsel %vm396_vm0, %v392_v59, 0.0 }
 0x118   : > { %v986_v60 = vpop.eup %985  ;;  %v390_v63 = vmul.f32 %v984_v57, %v804_v49 }
 0x119   : > { %v406_v61 = vsel %vm396_vm0, %v391_v58, 0.0  ;;  %v988_v0 = vpop.eup %987  ;;  %v394_v2 = vmul.f32 %v986_v60, %v804_v49 }
 0x11a   : > { %407 = vadd.xlane.f32.xlu1 %v406_v61  ;;  %398 = vadd.xlane.f32.xlu0 %v397_v62  ;;  %v403_v3 = vsel %vm396_vm0, %v390_v63, 0.0  ;;  %v393_v4 = vmul.f32 %v988_v0, %v804_v49  ;;  %v990_v5 = vpop.eup %989 }
 0x11b   : > { %v415_v6 = vsel %vm396_vm0, %v394_v2, 0.0  ;;  %v395_v8 = vmul.f32 %v990_v5, %v804_v49 }
 0x11c   : > { %v412_v7 = vsel %vm396_vm0, %v393_v4, 0.0 }
 0x11d   : > { %v418_v9 = vsel %vm396_vm0, %v395_v8, 0.0 }
 0x11e   : > { %404 = vadd.xlane.f32.xlu1 %v403_v3  ;;  %410 = vadd.xlane.f32.xlu0 %v409_v1 }
 0x122   : > { %413 = vadd.xlane.f32.xlu1 %v412_v7  ;;  %416 = vadd.xlane.f32.xlu0 %v415_v6 }
 0x126   : > { %419 = vadd.xlane.f32.xlu1 %v418_v9 }
 0x1a3   : > { %v402_v10 = vpop.xlane.xlu0 %401 }
 0x1a4   : > { %v427_v13 = vrot.slane %v402_v10, 4 }
 0x1a6   : > { %v428_v14 = vmax.f32 %v402_v10, %v427_v13 }
 0x1a7   : > { %v408_v15 = vpop.xlane.xlu1 %407  ;;  %v399_v16 = vpop.xlane.xlu0 %398 }
 0x1a8   : > { %v429_v17 = vrot.slane %v428_v14, 2  ;;  %v439_v18 = vrot.slane %v408_v15, 4  ;;  %v421_v19 = vrot.slane %v399_v16, 4 }
 0x1aa   : > { %v430_v20 = vmax.f32 %v428_v14, %v429_v17  ;;  %v440_v21 = vmax.f32 %v408_v15, %v439_v18  ;;  %v422_v22 = vmax.f32 %v399_v16, %v421_v19 }
 0x1ab   : > { %v405_v23 = vpop.xlane.xlu1 %404  ;;  %v411_v24 = vpop.xlane.xlu0 %410 }
 0x1ac   : > { %v431_v25 = vrot.slane %v430_v20, 1  ;;  %v441_v32 = vrot.slane %v440_v21, 2  ;;  %v423_v33 = vrot.slane %v422_v22, 2  ;;  %v433_v34 = vrot.slane %v405_v23, 4 }
 0x1ad   : > { %v445_v35 = vrot.slane %v411_v24, 4 }
 0x1ae   : > { %v432_v36 = vmax.f32 %v430_v20, %v431_v25  ;;  %v442_v37 = vmax.f32 %v440_v21, %v441_v32  ;;  %v424_v38 = vmax.f32 %v422_v22, %v423_v33  ;;  %v434_v39 = vmax.f32 %v405_v23, %v433_v34 }
 0x1af   : > { %v446_v40 = vmax.f32 %v411_v24, %v445_v35  ;;  %v414_v41 = vpop.xlane.xlu1 %413  ;;  %v417_v42 = vpop.xlane.xlu0 %416 }
 0x1b0   : > { %v470_v43 = vsub.f32 %v402_v10, %v432_v36  ;;  %v443_v44 = vrot.slane %v442_v37, 1  ;;  %v425_v45 = vrot.slane %v424_v38, 1  ;;  %v435_v46 = vrot.slane %v434_v39, 2 }
 0x1b1   : > { %v447_v47 = vrot.slane %v446_v40, 2  ;;  %v451_v48 = vrot.slane %v414_v41, 4  ;;  %v457_v49 = vrot.slane %v417_v42, 4 }
 0x1b2   : > { %v479_v50 = vmul.f32 1.442695, %v470_v43  ;;  %v444_v51 = vmax.f32 %v442_v37, %v443_v44  ;;  %v426_v52 = vmax.f32 %v424_v38, %v425_v45  ;;  %v436_v53 = vmax.f32 %v434_v39, %v435_v46 }
 0x1b3   : > { %v448_v54 = vmax.f32 %v446_v40, %v447_v47  ;;  %v452_v55 = vmax.f32 %v414_v41, %v451_v48  ;;  %v458_v56 = vmax.f32 %v417_v42, %v457_v49  ;;  %v420_v57 = vpop.xlane.xlu1 %419 }
 0x1b4   : > { %991 = vpow2.f32 %v479_v50  ;;  %v472_v58 = vsub.f32 %v408_v15, %v444_v51  ;;  %v469_v59 = vsub.f32 %v399_v16, %v426_v52  ;;  %v437_v60 = vrot.slane %v436_v53, 1 }
 0x1b5   : > { %v449_v61 = vrot.slane %v448_v54, 1  ;;  %v453_v62 = vrot.slane %v452_v55, 2  ;;  %v459_v63 = vrot.slane %v458_v56, 2  ;;  %v463_v0 = vrot.slane %v420_v57, 4 }
 0x1b6   : > { %v483_v1 = vmul.f32 1.442695, %v472_v58  ;;  %v477_v2 = vmul.f32 1.442695, %v469_v59  ;;  %v438_v3 = vmax.f32 %v436_v53, %v437_v60 }
 0x1b7   : > { %v450_v4 = vmax.f32 %v448_v54, %v449_v61  ;;  %v454_v5 = vmax.f32 %v452_v55, %v453_v62  ;;  %v460_v6 = vmax.f32 %v458_v56, %v459_v63  ;;  %v464_v7 = vmax.f32 %v420_v57, %v463_v0 }
 0x1b8   : > { %993 = vpow2.f32 %v483_v1  ;;  %v471_v8 = vsub.f32 %v405_v23, %v438_v3 }
 0x1b9   : > { %995 = vpow2.f32 %v477_v2  ;;  %v473_v9 = vsub.f32 %v411_v24, %v450_v4  ;;  %v455_v10 = vrot.slane %v454_v5, 1  ;;  %v461_v13 = vrot.slane %v460_v6, 1 }
 0x1ba   : > { %v481_v14 = vmul.f32 1.442695, %v471_v8  ;;  %v465_v15 = vrot.slane %v464_v7, 2 }
 0x1bb   : > { %v485_v16 = vmul.f32 1.442695, %v473_v9  ;;  %v456_v17 = vmax.f32 %v454_v5, %v455_v10  ;;  %v462_v18 = vmax.f32 %v460_v6, %v461_v13 }
 0x1bc   : > { %997 = vpow2.f32 %v481_v14  ;;  %v466_v19 = vmax.f32 %v464_v7, %v465_v15 }
 0x1bd   : > { %999 = vpow2.f32 %v485_v16  ;;  %v474_v20 = vsub.f32 %v414_v41, %v456_v17  ;;  %v475_v21 = vsub.f32 %v417_v42, %v462_v18 }
 0x1be   : > { %v1301_v22 = vpop.eup %991  ;;  %v467_v25 = vrot.slane %v466_v19, 1 }
 0x1bf   : > { %v499_v32 = vrot.slane %v1301_v22, 4  ;;  %v487_v23 = vmul.f32 1.442695, %v474_v20  ;;  %v489_v33 = vmul.f32 1.442695, %v475_v21 }
 0x1c0   : > { %v468_v24 = vmax.f32 %v466_v19, %v467_v25 }
 0x1c1   : > { %v500_v34 = vadd.f32 %v1301_v22, %v499_v32  ;;  %1001 = vpow2.f32 %v487_v23 }
 0x1c2   : > { %v1305_v35 = vpop.eup %993  ;;  %1003 = vpow2.f32 %v489_v33  ;;  %v476_v36 = vsub.f32 %v420_v57, %v468_v24 }
 0x1c3   : > { %v1307_v37 = vpop.eup %995  ;;  %v501_v38 = vrot.slane %v500_v34, 2  ;;  %v511_v39 = vrot.slane %v1305_v35, 4 }
 0x1c4   : > { %v493_v40 = vrot.slane %v1307_v37, 4  ;;  %v491_v41 = vmul.f32 1.442695, %v476_v36 }
 0x1c5   : > { %v502_v42 = vadd.f32 %v501_v38, %v500_v34  ;;  %v512_v43 = vadd.f32 %v1305_v35, %v511_v39 }
 0x1c6   : > { %v1312_v44 = vpop.eup %997  ;;  %v494_v45 = vadd.f32 %v1307_v37, %v493_v40  ;;  %1005 = vpow2.f32 %v491_v41 }
 0x1c7   : > { %v1315_v46 = vpop.eup %999  ;;  %v503_v47 = vrot.slane %v502_v42, 1  ;;  %v513_v48 = vrot.slane %v512_v43, 2  ;;  %v505_v49 = vrot.slane %v1312_v44, 4 }
 0x1c8   : > { %v495_v50 = vrot.slane %v494_v45, 2  ;;  %v517_v51 = vrot.slane %v1315_v46, 4 }
 0x1c9   : > { %v504_v52 = vadd.f32 %v503_v47, %v502_v42  ;;  %v514_v53 = vadd.f32 %v513_v48, %v512_v43  ;;  %v506_v54 = vadd.f32 %v1312_v44, %v505_v49 }
 0x1ca   : > { %v496_v55 = vadd.f32 %v495_v50, %v494_v45  ;;  %v518_v56 = vadd.f32 %v1315_v46, %v517_v51 }
 0x1cb   : > { %v1321_v57 = vpop.eup %1001  ;;  %1007 = vrcp.f32 %v504_v52  ;;  %v515_v58 = vrot.slane %v514_v53, 1  ;;  %v507_v59 = vrot.slane %v506_v54, 2 }
 0x1cc   : > { %v1323_v60 = vpop.eup %1003  ;;  %v497_v61 = vrot.slane %v496_v55, 1  ;;  %v519_v62 = vrot.slane %v518_v56, 2  ;;  %v523_v63 = vrot.slane %v1321_v57, 4 }
 0x1cd   : > { %v516_v0 = vadd.f32 %v515_v58, %v514_v53  ;;  %v508_v1 = vadd.f32 %v507_v59, %v506_v54  ;;  %v529_v2 = vrot.slane %v1323_v60, 4 }
 0x1ce   : > { %v498_v3 = vadd.f32 %v497_v61, %v496_v55  ;;  %v520_v4 = vadd.f32 %v519_v62, %v518_v56  ;;  %v524_v5 = vadd.f32 %v1321_v57, %v523_v63 }
 0x1cf   : > { %1009 = vrcp.f32 %v516_v0  ;;  %v509_v6 = vrot.slane %v508_v1, 1  ;;  %v530_v7 = vadd.f32 %v1323_v60, %v529_v2 }
 0x1d0   : > { %v1329_v8 = vpop.eup %1005  ;;  %1011 = vrcp.f32 %v498_v3  ;;  %v521_v9 = vrot.slane %v520_v4, 1  ;;  %v525_v10 = vrot.slane %v524_v5, 2 }
 0x1d1   : > { %v510_v13 = vadd.f32 %v509_v6, %v508_v1  ;;  %v531_v14 = vrot.slane %v530_v7, 2  ;;  %v535_v15 = vrot.slane %v1329_v8, 4 }
 0x1d2   : > { %v526_v16 = vadd.f32 %v525_v10, %v524_v5  ;;  %v522_v17 = vadd.f32 %v521_v9, %v520_v4 }
 0x1d3   : > { %1013 = vrcp.f32 %v510_v13  ;;  %v532_v18 = vadd.f32 %v531_v14, %v530_v7  ;;  %v536_v19 = vadd.f32 %v1329_v8, %v535_v15 }
 0x1d4   : > { %v527_v20 = vrot.slane %v526_v16, 1  ;;  %1015 = vrcp.f32 %v522_v17 }
 0x1d5   : > { %v1008_v21 = vpop.eup %1007  ;;  %v537_v25 = vrot.slane %v536_v19, 2  ;;  %v533_v32 = vrot.slane %v532_v18, 1 }
 0x1d6   : > { %v550_v23 = vmul.f32 %v1008_v21, %v504_v52  ;;  %v528_v33 = vadd.f32 %v527_v20, %v526_v16 }
 0x1d7   : > { %v534_v24 = vadd.f32 %v533_v32, %v532_v18  ;;  %v538_v34 = vadd.f32 %v537_v25, %v536_v19 }
 0x1d8   : > { %v558_v36 = vsub.f32 2.0, %v550_v23  ;;  %1017 = vrcp.f32 %v528_v33 }
 0x1d9   : > { %v1010_v38 = vpop.eup %1009  ;;  %v539_v39 = vrot.slane %v538_v34, 1  ;;  %1019 = vrcp.f32 %v534_v24 }
 0x1da   : > { %v1012_v40 = vpop.eup %1011  ;;  %v566_v41 = vmul.f32 %v1008_v21, %v558_v36  ;;  %v552_v42 = vmul.f32 %v1010_v38, %v516_v0 }
 0x1db   : > { %v549_v43 = vmul.f32 %v1012_v40, %v498_v3  ;;  %v540_v45 = vadd.f32 %v539_v39, %v538_v34 }
 0x1dc   : > { %v574_v47 = vmul.f32 %v1301_v22, %v566_v41  ;;  %v560_v48 = vsub.f32 2.0, %v552_v42 }
 0x1dd   : > { %v1014_v49 = vpop.eup %1013  ;;  %v557_v50 = vsub.f32 2.0, %v549_v43  ;;  %1021 = vrcp.f32 %v540_v45 }
 0x1de   : > { %v1016_v51 = vpop.eup %1015  ;;  %v551_v52 = vmul.f32 %v1014_v49, %v510_v13  ;;  %v568_v53 = vmul.f32 %v1010_v38, %v560_v48  ;;  %v582_v54 = vmul.f32 %v574_v47, %v1264_v26 }
 0x1df   : > { %v565_v55 = vmul.f32 %v1012_v40, %v557_v50  ;;  %v553_v56 = vmul.f32 %v1016_v51, %v522_v17 }
 0x1e0   : > { %v559_v58 = vsub.f32 2.0, %v551_v52  ;;  %v576_v59 = vmul.f32 %v1305_v35, %v568_v53  ;;  %590 = vst [vmem:[%s1340_s16 + $0x8] sm:$0xff] %v582_v54  ;;  %v603_v22 = vrot.slane %v582_v54, 4 }
 0x1e1   : > { %v573_v61 = vmul.f32 %v1307_v37, %v565_v55  ;;  %v561_v62 = vsub.f32 2.0, %v553_v56 }
 0x1e2   : > { %v1018_v63 = vpop.eup %1017  ;;  %v567_v0 = vmul.f32 %v1014_v49, %v559_v58  ;;  %v584_v1 = vmul.f32 %v576_v59, %v1279_v30  ;;  %v604_v26 = vadd.f32 %v603_v22, %v582_v54 }
 0x1e3   : > { %v1020_v2 = vpop.eup %1019  ;;  %v554_v3 = vmul.f32 %v1018_v63, %v528_v33  ;;  %v569_v4 = vmul.f32 %v1016_v51, %v561_v62  ;;  %v581_v35 = vmul.f32 %v573_v61, %v1232_v11 }
 0x1e4   : > { %v575_v5 = vmul.f32 %v1312_v44, %v567_v0  ;;  %v555_v6 = vmul.f32 %v1020_v2, %v534_v24  ;;  %592 = vst [vmem:[%s1340_s16 + $0x18] sm:$0xff] %v584_v1  ;;  %v605_v7 = vrot.slane %v604_v26, 2  ;;  %v615_v9 = vrot.slane %v584_v1, 4 }
 0x1e5   : > { %v562_v37 = vsub.f32 2.0, %v554_v3  ;;  %v577_v10 = vmul.f32 %v1315_v46, %v569_v4  ;;  %589 = vst [vmem:[%s1340_s16] sm:$0xff] %v581_v35  ;;  %v597_v13 = vrot.slane %v581_v35, 4 }
 0x1e6   : > { %v563_v30 = vsub.f32 2.0, %v555_v6  ;;  %v583_v14 = vmul.f32 %v575_v5, %v1270_v28  ;;  %v616_v15 = vadd.f32 %v615_v9, %v584_v1  ;;  %v606_v20 = vadd.f32 %v605_v7, %v604_v26 }
 0x1e7   : > { %v1022_v16 = vpop.eup %1021  ;;  %v570_v17 = vmul.f32 %v1018_v63, %v562_v37  ;;  %v585_v11 = vmul.f32 %v577_v10, %v1235_v12  ;;  %v598_v44 = vadd.f32 %v597_v13, %v581_v35 }
 0x1e8   : > { %v556_v18 = vmul.f32 %v1022_v16, %v540_v45  ;;  %v571_v19 = vmul.f32 %v1020_v2, %v563_v30  ;;  %591 = vst [vmem:[%s1340_s16 + $0x10] sm:$0xff] %v583_v14  ;;  %v609_v21 = vrot.slane %v583_v14, 4  ;;  %v617_v32 = vrot.slane %v616_v15, 2 }
 0x1e9   : > { %v578_v46 = vmul.f32 %v1321_v57, %v570_v17  ;;  %593 = vst [vmem:[%s1340_s16 + $0x20] sm:$0xff] %v585_v11  ;;  %v599_v25 = vrot.slane %v598_v44, 2  ;;  %v621_v28 = vrot.slane %v585_v11, 4  ;;  %v607_v42 = vrot.slane %v606_v20, 1 }
 0x1ea   : > { %v564_v23 = vsub.f32 2.0, %v556_v18  ;;  %v579_v33 = vmul.f32 %v1323_v60, %v571_v19  ;;  %v610_v24 = vadd.f32 %v609_v21, %v583_v14  ;;  %v618_v36 = vadd.f32 %v617_v32, %v616_v15 }
 0x1eb   : > { %v586_v12 = vmul.f32 %v578_v46, %v1267_v27  ;;  %v600_v34 = vadd.f32 %v599_v25, %v598_v44  ;;  %v622_v38 = vadd.f32 %v621_v28, %v585_v11  ;;  %v608_v53 = vadd.f32 %v607_v42, %v606_v20 }
 0x1ec   : > { %v572_v39 = vmul.f32 %v1022_v16, %v564_v23  ;;  %v587_v40 = vmul.f32 %v579_v33, %v1273_v29  ;;  %v611_v57 = vrot.slane %v610_v24, 2  ;;  %v619_v49 = vrot.slane %v618_v36, 1 }
 0x1ed   : > { %594 = vst [vmem:[%s1340_s16 + $0x28] sm:$0xff] %v586_v12  ;;  %v601_v41 = vrot.slane %v600_v34, 1  ;;  %v623_v43 = vrot.slane %v622_v38, 2  ;;  %v627_v45 = vrot.slane %v586_v12, 4 }
 0x1ee   : > { %v580_v60 = vmul.f32 %v1329_v8, %v572_v39  ;;  %595 = vst [vmem:[%s1340_s16 + $0x30] sm:$0xff] %v587_v40  ;;  %v612_v47 = vadd.f32 %v611_v57, %v610_v24  ;;  %v633_v27 = vrot.slane %v587_v40, 4  ;;  %v620_v22 = vadd.f32 %v619_v49, %v618_v36 }
 0x1ef   : > { %v602_v48 = vadd.f32 %v601_v41, %v600_v34  ;;  %v624_v50 = vadd.f32 %v623_v43, %v622_v38  ;;  %v628_v51 = vadd.f32 %v627_v45, %v586_v12 }
 0x1f0   : > { %v588_v29 = vmul.f32 %v580_v60, %v1283_v31  ;;  %v613_v52 = vrot.slane %v612_v47, 1  ;;  %v634_v8 = vadd.f32 %v633_v27, %v587_v40 }
 0x1f1   : > { %v625_v54 = vrot.slane %v624_v50, 1  ;;  %v629_v55 = vrot.slane %v628_v51, 2  ;;  %v654_v31 = vsel %vm653_vm1, %v608_v53, %v602_v48 }
 0x1f2   : > { %596 = vst [vmem:[%s1340_s16 + $0x38] sm:$0xff] %v588_v29  ;;  %v614_v56 = vadd.f32 %v613_v52, %v612_v47  ;;  %v635_v58 = vrot.slane %v634_v8, 2  ;;  %v639_v59 = vrot.slane %v588_v29, 4 }
 0x1f3   : > { %v630_v61 = vadd.f32 %v629_v55, %v628_v51 }
 0x1f4   : > { %1036 = shalt.err (!%p1033_p3)
}
 0x1f5   : > { %s1037_s12 = scalar_lea.hbm %s1368_s30, 1024  ;;  %s1041_s15 = scalar_lea.hbm %s1451_s5, 2048 }
 0x1f6   : > { %p1038_p4 = scmp.ne.s32.totalorder %s1368_s30, %s1037_s12  ;;  %p1042_p9 = scmp.lt.u32.totalorder %s1368_s30, %s1451_s5 }
 0x1f7   : > { %p1043_p10 = scmp.lt.u32.totalorder %s1041_s15, %s1037_s12  ;;  %p1045_p12 = scmp.lt.u32.totalorder %s1037_s12, %s1368_s30 }
 0x1f8   : > { %p1039_p7 = pnand %p1038_p4, %p1191_p5 }
 0x1f9   : > { %p1044_p11 = por %p1043_p10, %p1042_p9 }
 0x1fa   : > { %p1040_p8 = pneg %p1039_p7 }
 0x1fb   : > { %p1046_p13 = por %p1045_p12, %p1044_p11 }
 0x1fd   : > { %p1047_p0 = pnand %p1046_p13, %p1040_p8 }
 0x1ff   : > { %1050 = shalt.err (!%p1047_p0)
}
 0x200   : > { %s1120_s25 = smov 128   ;;  %s1121_s26 = smov 8   ;;  %v636_v62 = vadd.f32 %v635_v58, %v634_v8  ;;  %v640_v63 = vadd.f32 %v639_v59, %v588_v29  ;;  %v656_v0 = vsel %vm655_vm2, %v614_v56, %v654_v31  ;;  %vm659_vm4 = vcmask 1044484  }
 0x201   : > { %930 = dma.vmem_to_hbm [thread:$0]  (%p1191_p5), %s1363_s17, 1024, %s1368_s30, %s675_s6, %s1120_s25, %s1120_s25, %s1121_s26   ;;  %v626_v1 = vadd.f32 %v625_v54, %v624_v50  ;;  %v631_v26 = vrot.slane %v630_v61, 1  ;;  %v658_v2 = vsel %vm657_vm3, %v620_v22, %v656_v0  ;;  %vm661_vm5 = vcmask 1045509  }
 0x202   : > { %s799_s7 = sshll.u32 %s1334_s14, 3  ;;  %v637_v3 = vrot.slane %v636_v62, 1  ;;  %v641_v4 = vrot.slane %v640_v63, 2  ;;  %vm663_vm6 = vcmask 1046534   ;;  %s807_s17 = sshll.u32 %s1174_s22, 7  ;;  %vm665_vm7 = vcmask 1047559  }
 0x203   : > { %v632_v35 = vadd.f32 %v631_v26, %v630_v61  ;;  %v660_v5 = vsel %vm659_vm4, %v626_v1, %v658_v2  ;;  %s222_s30 = scalar_lea.vmem [#allocation2], %s799_s7  ;;  %s1403_s11 = scalar_lea.hbm %s1450_s4, %s807_s17 }
 0x204   : > { %v642_v6 = vadd.f32 %v641_v4, %v640_v63  ;;  %v638_v7 = vadd.f32 %v637_v3, %v636_v62  ;;  %s688_s6 = sshll.u32 %s222_s30, 4  ;;  %s670_s12 = scalar_lea.sflag [#allocation3], %s1334_s14  ;;  %s1405_s6 = int_to_ptr.vmem [resolvable:$true] %s688_s6 }
 0x205   : > { %v662_v37 = vsel %vm661_vm5, %v632_v35, %v660_v5  ;;  %s1051_s9 = scalar_lea.vmem %s1405_s6, 128  ;;  %s1122_s22 = smov [#allocation2]  }
 0x206   : > { %v643_v9 = vrot.slane %v642_v6, 1  ;;  %v664_v13 = vsel %vm663_vm6, %v638_v7, %v662_v37  ;;  %p1052_p1 = scmp.ne.s32.totalorder %s1405_s6, %s1051_s9  ;;  %s1055_s13 = sshll.u32 %s1122_s22, 4  ;;  %s1056_s13 = int_to_ptr.vmem [resolvable:$false] %s1055_s13 }
 0x207   : > { %s1057_s15 = scalar_lea.vmem %s1056_s13, 256  ;;  %p1058_p4 = scmp.lt.s32.totalorder %s1405_s6, %s1056_s13 }
 0x208   : > { %v644_v10 = vadd.f32 %v643_v9, %v642_v6  ;;  %p1053_p2 = pnand %p1052_p1, %p1191_p5  ;;  %p1059_p7 = scmp.lt.s32.totalorder %s1057_s15, %s1051_s9 }
 0x20a   : > { %v666_v30 = vsel %vm665_vm7, %v644_v10, %v664_v13  ;;  %p1054_p3 = pneg %p1053_p2  ;;  %p1060_p8 = por %p1059_p7, %p1058_p4 }
 0x20b   : > { %668 = vst [vmem:[%s222_s30] sm:$0xff] %v666_v30 }
 0x20c   : > { %p1061_p9 = pnand %p1060_p8, %p1054_p3 }
 0x20e   : > { %1064 = shalt.err (!%p1061_p9)
}
 0x20f   : > { %s1065_s14 = scalar_lea.hbm %s1403_s11, 128  ;;  %s1069_s25 = scalar_lea.hbm %s1450_s4, 256 }
 0x210   : > { %p1066_p10 = scmp.ne.s32.totalorder %s1403_s11, %s1065_s14  ;;  %p1070_p13 = scmp.lt.u32.totalorder %s1403_s11, %s1450_s4 }
 0x211   : > { %p1071_p0 = scmp.lt.u32.totalorder %s1069_s25, %s1065_s14  ;;  %p1073_p2 = scmp.lt.u32.totalorder %s1065_s14, %s1403_s11 }
 0x212   : > { %p1067_p11 = pnand %p1066_p10, %p1191_p5 }
 0x213   : > { %p1072_p1 = por %p1071_p0, %p1070_p13 }
 0x214   : > { %p1068_p12 = pneg %p1067_p11 }
 0x215   : > { %p1074_p3 = por %p1073_p2, %p1072_p1 }
 0x217   : > { %p1075_p4 = pnand %p1074_p3, %p1068_p12 }
 0x219   : > { %1078 = shalt.err (!%p1075_p4)
}
 0x21a   : > { %929 = dma.vmem_to_hbm [thread:$0]  (%p1191_p5), %s1405_s6, 128, %s1403_s11, %s670_s12  }
 0x21b PF: > { %p940_p7 = scmp.ge.s32.totalorder %s1117_s21, 2  ;;  %s716_s17 = sand.u32 1, %s1105_s18  }
 0x21c   : > { %s717_s30 = scalar_lea.sflag [#allocation3], %s716_s17 }
 0x21d   : > { %p934_p8 = pnand %p940_p7, %p1195_p6 }
 0x21f   : > { %1096 = dma.done.wait (!%p934_p8), %s717_s30, 128  }
 0x220   : > { %1098 = vsyncadd (!%p934_p8), %s717_s30, 4294967168  ;;  %s726_s8 = scalar_lea.sflag [#allocation5], %s716_s17 }
 0x221   : > { %1100 = dma.done.wait (!%p934_p8), %s726_s8, 1024  }
 0x222   : > { %1102 = vsyncadd (!%p934_p8), %s726_s8, 4294966272  ;;  %p19_p5 = scmp.ge.s32.totalorder %s1178_s24, 4   ;;  %s1454_s18 = smov %s1109_s19 }
 0x223   : > { %s1455_s19 = smov %s1113_s20  ;;  %s1456_s20 = smov %s1189_s27 }
 0x224   : > { %s1457_s21 = smov %s1178_s24  ;;  %21 = sbr.rel (!%p19_p5) target bundleno = 5 (0x5), region = 88 }
 0x22b   :  { %731 = vsyncpa [#allocation3], 1 }
 0x22c   :  { %733 = vsyncpa [#allocation3 + $0x1], 1 }
 0x22d   :  { %734 = vsyncpa [#allocation5], 1 }
 0x22e   :  { %736 = vsyncpa [#allocation5 + $0x1], 1 }

</bundles_post_ra>
